<compile_context>
chip_gen: v5e
topology: v5e:2x2
jax: 0.10.0
libtpu: 0.0.40
codegen_flags: <defaults>
</compile_context>

<pallas_src>
import functools

import jax
import jax.numpy as jnp
from jax.experimental import pallas as pl
from jax.experimental.pallas import tpu as pltpu


def _unembed_kernel(x_ref, o_ref):
    # x_ref: (1, tl, tc)  ->  o_ref: (1, tc, tl)
    o_ref[...] = jnp.transpose(x_ref[...], (0, 2, 1))


def _pick_tile(dim, quantum, cap):
    """Largest multiple of `quantum` that divides `dim`, capped at `cap`.
    Falls back to the full dim (always a legal block size)."""
    t = min(cap, dim)
    t = (t // quantum) * quantum
    while t >= quantum:
        if dim % t == 0:
            return t
        t -= quantum
    return dim


def patch_unembed(x, x_size):
    """PatchUnEmbed.forward: x (B, L=H*W, C) -> (B, C, H, W), same dtype."""
    H, W = x_size
    B, L, C = x.shape
    assert L == H * W, f"L={L} must equal H*W={H * W}"

    # Input block last dim (tc) and output block last dim (tl) must be
    # lane-dense (multiple of 128) or the full dimension.
    tl = _pick_tile(L, 128, 1024)
    tc = _pick_tile(C, 128, 512)

    out = pl.pallas_call(
        _unembed_kernel,
        out_shape=jax.ShapeDtypeStruct((B, C, L), x.dtype),
        grid=(B, L // tl, C // tc),
        in_specs=[pl.BlockSpec((1, tl, tc), lambda b, i, j: (b, i, j))],
        out_specs=pl.BlockSpec((1, tc, tl), lambda b, i, j: (b, j, i)),
        compiler_params=pltpu.CompilerParams(
            dimension_semantics=("parallel", "parallel", "parallel")),
    )(x)
    # (B, C, L) -> (B, C, H, W): contiguous split of the last axis, free reshape.
    return out.reshape(B, C, H, W)


if __name__ == "__main__":
    key = jax.random.PRNGKey(0)

    # Small shapes consistent with the module: embed_dim=96, 16x16 token grid.
    B, H, W, C = 2, 16, 16, 96
    x = jax.random.normal(key, (B, H * W, C), jnp.float32)

    fwd = jax.jit(functools.partial(patch_unembed, x_size=(H, W)))
    y = fwd(x)
    jax.block_until_ready(y)

    ref = jnp.transpose(x, (0, 2, 1)).reshape(B, C, H, W)
    assert y.shape == (B, C, H, W) and y.dtype == x.dtype
    assert bool(jnp.array_equal(y, ref))
    print("KERNEL_OK")
</pallas_src>

<mosaic_0001>
module attributes {stable_mosaic.version = 11 : i64} {
  func.func @_unembed_kernel(%arg0: i32, %arg1: i32, %arg2: i32, %arg3: memref<1x256x96xf32, #tpu.memory_space<vmem>>, %arg4: memref<1x96x256xf32, #tpu.memory_space<vmem>>) attributes {dimension_semantics = [#tpu.dimension_semantics<parallel>, #tpu.dimension_semantics<parallel>, #tpu.dimension_semantics<parallel>], iteration_bounds = array<i64: 2, 1, 1>, scalar_prefetch = 0 : i64, scratch_operands = 0 : i64, tpu.core_type = #tpu.core_type<tc>, window_params = [{transform_indices = @transform_0, window_bounds = array<i64: 1, 256, 96>}, {transform_indices = @transform_1, window_bounds = array<i64: 1, 96, 256>}]} {
    %c0 = arith.constant 0 : index
    %c0_0 = arith.constant 0 : index
    %c0_1 = arith.constant 0 : index
    %0 = vector.load %arg3[%c0, %c0_0, %c0_1] : memref<1x256x96xf32, #tpu.memory_space<vmem>>, vector<1x256x96xf32>
    %1 = tpu.transpose %0, [0, 2, 1] : vector<1x256x96xf32> -> vector<1x96x256xf32>
    %c0_2 = arith.constant 0 : index
    %c0_3 = arith.constant 0 : index
    %c0_4 = arith.constant 0 : index
    %2 = vector.load %arg4[%c0_2, %c0_3, %c0_4] : memref<1x96x256xf32, #tpu.memory_space<vmem>>, vector<1x96x256xf32>
    tpu.vector_store %arg4[%c0_2, %c0_3, %c0_4], %1 {strides = array<i32>} : memref<1x96x256xf32, #tpu.memory_space<vmem>>, vector<1x96x256xf32>,
    return
  }
  func.func @transform_0(%arg0: i32, %arg1: i32, %arg2: i32) -> (i32, i32, i32) {
    %c0_i32 = arith.constant 0 : i32
    return %arg0, %arg1, %arg2 : i32, i32, i32
  }
  func.func @transform_1(%arg0: i32, %arg1: i32, %arg2: i32) -> (i32, i32, i32) {
    %c0_i32 = arith.constant 0 : i32
    return %arg0, %arg2, %arg1 : i32, i32, i32
  }
}

</mosaic_0001>

<bundles_post_ra>
// kernel: patch_unembed.1
= control target key start
LH: loop header
LB: loop body
LE: loop exit
PB: predicated region body
PF: predicated region fallthrough
CT: control target
= control target key end

     0   :  { %s489_s6 = smov 0   ;;  %s491_s7 = smov 0   ;;  %s586_s0 = inlined_call_operand.vmem [shape: f32[2,256,96], index: 0, kind: input, shape index: {}]   ;;  %s587_s1 = inlined_call_operand.vmem [shape: f32[2,96,256], index: 1, kind: output, shape index: {}]  }
   0x1   :  { %s493_s8 = smov 0  }
   0x2 LB: > { %s30_s9 = sadd.s32 1, %s473_s7  ;;  %p423_p0 = scmp.ge.s32.totalorder %s477_s8, 1  ;;  %s477_s8 = sphi %s493_s8, %s11_s8   ;;  %s473_s7 = sphi %s491_s7, %s589_s7   ;;  %s469_s6 = sphi %s489_s6, %s588_s6  }
   0x3   : > { %p32_p1 = scmp.ge.s32.totalorder %s30_s9, 2  ;;  %p122_p2 = scmp.lt.s32.totalorder %s477_s8, 3 }
   0x5   : > { %s591_s9 = smov (%p32_p1, %s30_s9), 0  ;;  %p123_p3 = pnand %p423_p0, %p122_p2 }
   0x6   : > { %p159_p4 = scmp.lt.s32.totalorder (!%p123_p3), %s469_s6, 1 }
   0x7   : > { %126 = sbr.rel (%p123_p3) target bundleno = 271 (0x10f), region = 24 }
   0xc   : > { %s593_s6 = smov (!%p159_p4, %s469_s6), 1 }
   0xd   : > { %s429_s10 = sshll.u32 %s593_s6, 8  ;;  %s430_s14 = smul.u32 192, %s593_s6 }
   0xe   : > { %s513_s13 = scalar_lea.vmem %s586_s0, %s429_s10 }
   0xf   : > { %v203_v0 = vld [vmem:[%s513_s13 + $0x80] sm:$0xff]  ;;  %v204_v2 = vld [vmem:[%s513_s13 + $0x88] sm:$0xff]  ;;  %v205_v4 = vld [vmem:[%s513_s13 + $0x90] sm:$0xff]  ;;  %s551_s17 = scalar_lea.vmem %s587_s1, %s430_s14 }
  0x10   : > { %v187_v1 = vld [vmem:[%s513_s13] sm:$0xff]  ;;  %251 = vxpose.xlu1.b32.start [1/16] (narrow) %v203_v0, 96  ;;  %v188_v3 = vld [vmem:[%s513_s13 + $0x8] sm:$0xff]  ;;  %v189_v5 = vld [vmem:[%s513_s13 + $0x10] sm:$0xff] }
  0x11   : > { %219 = vxpose.xlu0.b32.start [1/16] (narrow) %v187_v1, 96  ;;  %v206_v6 = vld [vmem:[%s513_s13 + $0x98] sm:$0xff]  ;;  %v207_v8 = vld [vmem:[%s513_s13 + $0xa0] sm:$0xff]  ;;  %v208_v10 = vld [vmem:[%s513_s13 + $0xa8] sm:$0xff] }
  0x12   : > { %v190_v7 = vld [vmem:[%s513_s13 + $0x18] sm:$0xff]  ;;  %v191_v9 = vld [vmem:[%s513_s13 + $0x20] sm:$0xff]  ;;  %v192_v11 = vld [vmem:[%s513_s13 + $0x28] sm:$0xff] }
  0x13   : > { %v209_v12 = vld [vmem:[%s513_s13 + $0xb0] sm:$0xff]  ;;  %v210_v14 = vld [vmem:[%s513_s13 + $0xb8] sm:$0xff]  ;;  %v211_v16 = vld [vmem:[%s513_s13 + $0xc0] sm:$0xff] }
  0x14   : > { %v193_v13 = vld [vmem:[%s513_s13 + $0x30] sm:$0xff]  ;;  %v194_v15 = vld [vmem:[%s513_s13 + $0x38] sm:$0xff]  ;;  %v195_v17 = vld [vmem:[%s513_s13 + $0x40] sm:$0xff] }
  0x15   : > { %v212_v18 = vld [vmem:[%s513_s13 + $0xc8] sm:$0xff]  ;;  %v213_v20 = vld [vmem:[%s513_s13 + $0xd0] sm:$0xff]  ;;  %v214_v22 = vld [vmem:[%s513_s13 + $0xd8] sm:$0xff] }
  0x16   : > { %v196_v19 = vld [vmem:[%s513_s13 + $0x48] sm:$0xff]  ;;  %v197_v21 = vld [vmem:[%s513_s13 + $0x50] sm:$0xff]  ;;  %v198_v23 = vld [vmem:[%s513_s13 + $0x58] sm:$0xff] }
  0x17   : > { %v215_v24 = vld [vmem:[%s513_s13 + $0xe0] sm:$0xff]  ;;  %v216_v26 = vld [vmem:[%s513_s13 + $0xe8] sm:$0xff]  ;;  %v217_v28 = vld [vmem:[%s513_s13 + $0xf0] sm:$0xff] }
  0x18   : > { %252 = vxpose.xlu1.b32.cont [2/16] (narrow) %v204_v2, 96  ;;  %v199_v25 = vld [vmem:[%s513_s13 + $0x60] sm:$0xff]  ;;  %v200_v27 = vld [vmem:[%s513_s13 + $0x68] sm:$0xff]  ;;  %v201_v29 = vld [vmem:[%s513_s13 + $0x70] sm:$0xff] }
  0x19   : > { %220 = vxpose.xlu0.b32.cont [2/16] (narrow) %v188_v3, 96  ;;  %v218_v30 = vld [vmem:[%s513_s13 + $0xf8] sm:$0xff] }
  0x1a   : > { %v202_v31 = vld [vmem:[%s513_s13 + $0x78] sm:$0xff] }
  0x20   : > { %253 = vxpose.xlu1.b32.cont [3/16] (narrow) %v205_v4, 96 }
  0x21   : > { %221 = vxpose.xlu0.b32.cont [3/16] (narrow) %v189_v5, 96 }
  0x28   : > { %254 = vxpose.xlu1.b32.cont [4/16] (narrow) %v206_v6, 96 }
  0x29   : > { %222 = vxpose.xlu0.b32.cont [4/16] (narrow) %v190_v7, 96 }
  0x30   : > { %255 = vxpose.xlu1.b32.cont [5/16] (narrow) %v207_v8, 96 }
  0x31   : > { %223 = vxpose.xlu0.b32.cont [5/16] (narrow) %v191_v9, 96 }
  0x38   : > { %256 = vxpose.xlu1.b32.cont [6/16] (narrow) %v208_v10, 96 }
  0x39   : > { %224 = vxpose.xlu0.b32.cont [6/16] (narrow) %v192_v11, 96 }
  0x40   : > { %257 = vxpose.xlu1.b32.cont [7/16] (narrow) %v209_v12, 96 }
  0x41   : > { %225 = vxpose.xlu0.b32.cont [7/16] (narrow) %v193_v13, 96 }
  0x48   : > { %258 = vxpose.xlu1.b32.cont [8/16] (narrow) %v210_v14, 96 }
  0x49   : > { %226 = vxpose.xlu0.b32.cont [8/16] (narrow) %v194_v15, 96 }
  0x50   : > { %259 = vxpose.xlu1.b32.cont [9/16] (narrow) %v211_v16, 96 }
  0x51   : > { %227 = vxpose.xlu0.b32.cont [9/16] (narrow) %v195_v17, 96 }
  0x58   : > { %260 = vxpose.xlu1.b32.cont [10/16] (narrow) %v212_v18, 96 }
  0x59   : > { %228 = vxpose.xlu0.b32.cont [10/16] (narrow) %v196_v19, 96 }
  0x60   : > { %261 = vxpose.xlu1.b32.cont [11/16] (narrow) %v213_v20, 96 }
  0x61   : > { %229 = vxpose.xlu0.b32.cont [11/16] (narrow) %v197_v21, 96 }
  0x68   : > { %262 = vxpose.xlu1.b32.cont [12/16] (narrow) %v214_v22, 96 }
  0x69   : > { %230 = vxpose.xlu0.b32.cont [12/16] (narrow) %v198_v23, 96 }
  0x70   : > { %263 = vxpose.xlu1.b32.cont [13/16] (narrow) %v215_v24, 96 }
  0x71   : > { %231 = vxpose.xlu0.b32.cont [13/16] (narrow) %v199_v25, 96 }
  0x78   : > { %264 = vxpose.xlu1.b32.cont [14/16] (narrow) %v216_v26, 96 }
  0x79   : > { %232 = vxpose.xlu0.b32.cont [14/16] (narrow) %v200_v27, 96 }
  0x80   : > { %265 = vxpose.xlu1.b32.cont [15/16] (narrow) %v217_v28, 96 }
  0x81   : > { %233 = vxpose.xlu0.b32.cont [15/16] (narrow) %v201_v29, 96 }
  0x88   : > { %266 = vxpose.xlu1.b32.end [16/16] (narrow) %v218_v30, 96 }
  0x89   : > { %234 = vxpose.xlu0.b32.end [16/16] (narrow) %v202_v31, 96 }
  0xb4   : > { %v267_v32 = vpop.trf.xlu1 }
  0xb5   : > { %v235_v33 = vpop.trf.xlu0  ;;  %284 = vst [vmem:[%s551_s17 + $0x8] sm:$0xff] %v267_v32 }
  0xb6   : > { %283 = vst [vmem:[%s551_s17] sm:$0xff] %v235_v33 }
  0xbc   : > { %v268_v34 = vpop.trf.xlu1 }
  0xbd   : > { %v236_v35 = vpop.trf.xlu0  ;;  %286 = vst [vmem:[%s551_s17 + $0x18] sm:$0xff] %v268_v34 }
  0xbe   : > { %285 = vst [vmem:[%s551_s17 + $0x10] sm:$0xff] %v236_v35 }
  0xc4   : > { %v269_v36 = vpop.trf.xlu1 }
  0xc5   : > { %v237_v37 = vpop.trf.xlu0  ;;  %288 = vst [vmem:[%s551_s17 + $0x28] sm:$0xff] %v269_v36 }
  0xc6   : > { %287 = vst [vmem:[%s551_s17 + $0x20] sm:$0xff] %v237_v37 }
  0xcc   : > { %v270_v38 = vpop.trf.xlu1 }
  0xcd   : > { %v238_v39 = vpop.trf.xlu0  ;;  %290 = vst [vmem:[%s551_s17 + $0x38] sm:$0xff] %v270_v38 }
  0xce   : > { %289 = vst [vmem:[%s551_s17 + $0x30] sm:$0xff] %v238_v39 }
  0xd4   : > { %v271_v40 = vpop.trf.xlu1 }
  0xd5   : > { %v239_v41 = vpop.trf.xlu0  ;;  %292 = vst [vmem:[%s551_s17 + $0x48] sm:$0xff] %v271_v40 }
  0xd6   : > { %291 = vst [vmem:[%s551_s17 + $0x40] sm:$0xff] %v239_v41 }
  0xdc   : > { %v272_v42 = vpop.trf.xlu1 }
  0xdd   : > { %v240_v43 = vpop.trf.xlu0  ;;  %294 = vst [vmem:[%s551_s17 + $0x58] sm:$0xff] %v272_v42 }
  0xde   : > { %293 = vst [vmem:[%s551_s17 + $0x50] sm:$0xff] %v240_v43 }
  0xe4   : > { %v273_v44 = vpop.trf.xlu1 }
  0xe5   : > { %v241_v45 = vpop.trf.xlu0  ;;  %296 = vst [vmem:[%s551_s17 + $0x68] sm:$0xff] %v273_v44 }
  0xe6   : > { %295 = vst [vmem:[%s551_s17 + $0x60] sm:$0xff] %v241_v45 }
  0xec   : > { %v274_v46 = vpop.trf.xlu1 }
  0xed   : > { %v242_v47 = vpop.trf.xlu0  ;;  %298 = vst [vmem:[%s551_s17 + $0x78] sm:$0xff] %v274_v46 }
  0xee   : > { %297 = vst [vmem:[%s551_s17 + $0x70] sm:$0xff] %v242_v47 }
  0xf4   : > { %v275_v48 = vpop.trf.xlu1 }
  0xf5   : > { %v243_v49 = vpop.trf.xlu0  ;;  %300 = vst [vmem:[%s551_s17 + $0x88] sm:$0xff] %v275_v48 }
  0xf6   : > { %299 = vst [vmem:[%s551_s17 + $0x80] sm:$0xff] %v243_v49 }
  0xfc   : > { %v276_v50 = vpop.trf.xlu1 }
  0xfd   : > { %v244_v51 = vpop.trf.xlu0  ;;  %302 = vst [vmem:[%s551_s17 + $0x98] sm:$0xff] %v276_v50 }
  0xfe   : > { %301 = vst [vmem:[%s551_s17 + $0x90] sm:$0xff] %v244_v51 }
 0x104   : > { %v277_v52 = vpop.trf.xlu1 }
 0x105   : > { %v245_v53 = vpop.trf.xlu0  ;;  %304 = vst [vmem:[%s551_s17 + $0xa8] sm:$0xff] %v277_v52 }
 0x106   : > { %303 = vst [vmem:[%s551_s17 + $0xa0] sm:$0xff] %v245_v53 }
 0x10c   : > { %v278_v54 = vpop.trf.xlu1 }
 0x10d   : > { %v246_v55 = vpop.trf.xlu0  ;;  %306 = vst [vmem:[%s551_s17 + $0xb8] sm:$0xff] %v278_v54 }
 0x10e   : > { %305 = vst [vmem:[%s551_s17 + $0xb0] sm:$0xff] %v246_v55 }
 0x10f PF: > { %s11_s8 = sadd.s32 1, %s477_s8   ;;  %s588_s6 = smov %s473_s7 }
 0x110   : > { %p8_p5 = scmp.ge.s32.totalorder %s11_s8, 4   ;;  %s589_s7 = smov %s591_s9 }
 0x112   :  { %10 = sbr.rel (!%p8_p5) target bundleno = 2 (0x2), region = 54 }

</bundles_post_ra>
